<compile_context>
chip_gen: v7x
topology: tpu7x:2x2x1
jax: 0.10.0
libtpu: 0.0.40
codegen_flags: <defaults>
</compile_context>

<pallas_src>
import jax
import jax.numpy as jnp
from jax.experimental import pallas as pl
from jax.experimental.pallas import tpu as pltpu

_LANES = 128           # batch elements packed per sublane-row (one full lane group)
_MAX_TILE_ROWS = 512   # 512 packed rows = 65536 batch elems/tile (v5e-safe working set)


def _round_up(a, m):
    return -(-a // m) * m


def _linear_kernel(b_ref, x_ref, w_ref, o_ref):
    # b_ref : (1, 1)           SMEM  scalar bias (no padded VMEM tile / extra DMA)
    # x_ref : (TILE_ROWS, K*128) VMEM  128 batch rows packed per sublane-row, lane-dense
    # w_ref : (K*128, 128)     VMEM  block-diagonal weights (constant across the grid)
    # o_ref : (TILE_ROWS, 128) VMEM  lane-dense output (batch on lanes)
    x = x_ref[...].astype(jnp.float32)          # bf16 inputs upcast; reduction stays f32
    acc = jnp.dot(x, w_ref[...], preferred_element_type=jnp.float32)
    o_ref[...] = (acc + b_ref[0, 0]).astype(o_ref.dtype)


def _choose_tile_rows(packed_rows, row_align):
    """Packed-row tile: big (amortize ~0.35us/step) but >= ~8 grid steps when possible."""
    if packed_rows <= row_align:
        return packed_rows                       # single tile; equals full array extent
    tile = _round_up(-(-packed_rows // 8), row_align)   # aim for >= 8 steps (v7x 2 TCs)
    return min(_MAX_TILE_ROWS, tile)


def _block_diag_weights(w_t, lanes=_LANES):
    """(K, 1) -> (K*lanes, lanes): column c carries w in rows c*K .. c*K+K-1, else 0."""
    K = w_t.shape[0]
    rows = jnp.arange(K * lanes)
    cols = jnp.arange(lanes)
    w_tiled = jnp.tile(w_t[:, 0].astype(jnp.float32), lanes)      # row j holds w[j % K]
    return jnp.where((rows[:, None] // K) == cols[None, :], w_tiled[:, None], 0.0)


def linear_pallas(x, w_t, b):
    """y = x @ w_t + b.  x: (B, K) f32 or bf16, w_t: (K, 1) f32, b: (1,)/(1,1) -> (B, 1)."""
    B, K = x.shape
    assert w_t.shape == (K, 1)
    KL = K * _LANES

    itemsize = jnp.dtype(x.dtype).itemsize
    row_align = 8 * max(1, 4 // itemsize)            # f32 -> 8 sublanes, bf16 -> 16

    packed_rows = max(row_align, _round_up(-(-B // _LANES), row_align))
    tile_rows = _choose_tile_rows(packed_rows, row_align)
    grid_rows = -(-packed_rows // tile_rows)
    padded_rows = grid_rows * tile_rows
    B_pad = padded_rows * _LANES

    if B_pad != B:
        # Cheap zero padding (< one tile of rows); keeps every block lane-dense,
        # sublane-aligned and pipelined instead of one giant unblocked tile.
        x = jnp.pad(x, ((0, B_pad - B), (0, 0)))

    # Free re-view (row-major contiguous): packs 128 consecutive batch rows per
    # sublane-row.  No HBM transpose pass, no VMEM lane padding.
    x_packed = x.reshape(padded_rows, KL)

    w_block = _block_diag_weights(w_t)               # (KL, 128), tiny, built per call
    b_smem = jnp.reshape(b, (1, 1)).astype(jnp.float32)

    y_packed = pl.pallas_call(
        _linear_kernel,
        out_shape=jax.ShapeDtypeStruct((padded_rows, _LANES), x.dtype),
        grid=(grid_rows,),
        in_specs=[
            pl.BlockSpec((1, 1), lambda i: (0, 0),
                         memory_space=pltpu.MemorySpace.SMEM),
            pl.BlockSpec((tile_rows, KL), lambda i: (i, 0)),
            pl.BlockSpec((KL, _LANES), lambda i: (0, 0)),   # constant block: fetched once
        ],
        out_specs=pl.BlockSpec((tile_rows, _LANES), lambda i: (i, 0)),
        compiler_params=pltpu.CompilerParams(
            # Batch tiles are independent -> shardable across v7x's two TensorCores.
            dimension_semantics=("parallel",),
            # Working set: 2*(tile_rows*KL + tile_rows*128)*4B + 2*640KiB ≈ 7 MiB (f32)
            # at tile_rows=512 -> fits v5e's 16 MiB scoped VMEM; 32 MiB gives headroom.
            vmem_limit_bytes=32 * 1024 * 1024,
        ),
    )(b_smem, x_packed, w_block)

    # (padded_rows, 128) row-major == batch order -> free reshape, then drop padding.
    return y_packed.reshape(B_pad, 1)[:B]


class SimpleModelPallas:
    """JAX/Pallas port of SimpleModel: self.fc = nn.Linear(10, 1)."""

    def __init__(self, key):
        in_features, out_features = 10, 1
        k_w, k_b = jax.random.split(key)
        bound = 1.0 / (in_features ** 0.5)
        # torch weight is (out, in); store its transpose (in, out) for the kernel.
        self.w_t = jax.random.uniform(
            k_w, (in_features, out_features), jnp.float32, -bound, bound)
        self.b = jax.random.uniform(
            k_b, (1, out_features), jnp.float32, -bound, bound)

    def __call__(self, x):
        return linear_pallas(x, self.w_t, self.b)


if __name__ == "__main__":
    key = jax.random.PRNGKey(0)
    k_model, k_x1, k_x2, k_x3 = jax.random.split(key, 4)

    model = SimpleModelPallas(k_model)

    def reference(x):
        # Pure elementwise-f32 reference (avoids any XLA matmul precision ambiguity).
        return (jnp.sum(x.astype(jnp.float32) * model.w_t[:, 0], axis=1, keepdims=True)
                + model.b)

    # 1) Tiny batch -> padded to one full-extent tile.
    x1 = jax.random.normal(k_x1, (8, 10), jnp.float32)
    y1 = jax.block_until_ready(model(x1))
    assert y1.shape == (8, 1)
    assert jnp.allclose(y1, reference(x1), atol=1e-4, rtol=1e-4)

    # 2) Irregular larger batch -> padding + multi-step "parallel" grid path.
    x2 = jax.random.normal(k_x2, (2000, 10), jnp.float32)
    y2 = jax.block_until_ready(model(x2))
    assert y2.shape == (2000, 1)
    assert jnp.allclose(y2, reference(x2), atol=1e-4, rtol=1e-4)

    # 3) bf16 input path (halves the dominant HBM stream); f32 accumulation inside.
    x3 = jax.random.normal(k_x3, (256, 10), jnp.float32).astype(jnp.bfloat16)
    y3 = jax.block_until_ready(model(x3))
    assert y3.shape == (256, 1) and y3.dtype == jnp.bfloat16
    assert jnp.allclose(y3.astype(jnp.float32), reference(x3), atol=3e-2, rtol=3e-2)

    print("KERNEL_OK")
</pallas_src>

<mosaic_0001>
module attributes {stable_mosaic.version = 11 : i64} {
  func.func @_linear_kernel(%arg0: i32, %arg1: memref<1x1xf32, #tpu.memory_space<smem>>, %arg2: memref<8x1280xf32, #tpu.memory_space<vmem>>, %arg3: memref<1280x128xf32, #tpu.memory_space<vmem>>, %arg4: memref<8x128xf32, #tpu.memory_space<vmem>>) attributes {dimension_semantics = [#tpu.dimension_semantics<parallel>], iteration_bounds = array<i64: 1>, scalar_prefetch = 0 : i64, scratch_operands = 0 : i64, tpu.core_type = #tpu.core_type<tc>, window_params = [{transform_indices = @transform_0, window_bounds = array<i64: 1, 1>}, {transform_indices = @transform_1, window_bounds = array<i64: 8, 1280>}, {pipeline_mode = #tpu.pipeline_mode<synchronous>, transform_indices = @transform_2, window_bounds = array<i64: 1280, 128>}, {transform_indices = @transform_3, window_bounds = array<i64: 8, 128>}]} {
    %c0 = arith.constant 0 : index
    %c0_0 = arith.constant 0 : index
    %0 = vector.load %arg2[%c0, %c0_0] : memref<8x1280xf32, #tpu.memory_space<vmem>>, vector<8x1280xf32>
    %c0_1 = arith.constant 0 : index
    %c0_2 = arith.constant 0 : index
    %1 = vector.load %arg3[%c0_1, %c0_2] : memref<1280x128xf32, #tpu.memory_space<vmem>>, vector<1280x128xf32>
    %cst = arith.constant dense<0.000000e+00> : vector<8x128xf32>
    %2 = tpu.matmul %0, %1, %cst {dimension_numbers = #tpu.dot_dimension_numbers<[1], [0], [0], [1], [0, 0, 1, 1], [], []>} : vector<8x1280xf32>, vector<1280x128xf32>, vector<8x128xf32> -> vector<8x128xf32>
    %c0_3 = arith.constant 0 : index
    %c0_4 = arith.constant 0 : index
    %3 = memref.load %arg1[%c0_3, %c0_4] : memref<1x1xf32, #tpu.memory_space<smem>>
    %4 = vector.broadcast %3 : f32 to vector<8x128xf32>
    %5 = arith.addf %2, %4 : vector<8x128xf32>
    %c0_5 = arith.constant 0 : index
    %c0_6 = arith.constant 0 : index
    %6 = vector.load %arg4[%c0_5, %c0_6] : memref<8x128xf32, #tpu.memory_space<vmem>>, vector<8x128xf32>
    tpu.vector_store %arg4[%c0_5, %c0_6], %5 {strides = array<i32>} : memref<8x128xf32, #tpu.memory_space<vmem>>, vector<8x128xf32>,
    return
  }
  func.func @transform_0(%arg0: i32) -> (i32, i32) {
    %c0_i32 = arith.constant 0 : i32
    %c0_i32_0 = arith.constant 0 : i32
    %c0_i32_1 = arith.constant 0 : i32
    return %c0_i32, %c0_i32_0 : i32, i32
  }
  func.func @transform_1(%arg0: i32) -> (i32, i32) {
    %c0_i32 = arith.constant 0 : i32
    %c0_i32_0 = arith.constant 0 : i32
    return %arg0, %c0_i32 : i32, i32
  }
  func.func @transform_2(%arg0: i32) -> (i32, i32) {
    %c0_i32 = arith.constant 0 : i32
    %c0_i32_0 = arith.constant 0 : i32
    %c0_i32_1 = arith.constant 0 : i32
    return %c0_i32, %c0_i32_0 : i32, i32
  }
  func.func @transform_3(%arg0: i32) -> (i32, i32) {
    %c0_i32 = arith.constant 0 : i32
    %c0_i32_0 = arith.constant 0 : i32
    return %arg0, %c0_i32 : i32, i32
  }
}

</mosaic_0001>

<bundles_post_ra>
// kernel: tpu_custom_call.1
= control target key start
LH: loop header
LB: loop body
LE: loop exit
PB: predicated region body
PF: predicated region fallthrough
CT: control target
= control target key end

     0   :  { %9 = vsyncpa [#allocation4], 0  ;;  %s1064_s0 = inlined_call_operand.<no memory space> [shape: f32[1,1], index: 0, kind: input, shape index: {}]   ;;  %s1065_s1 = inlined_call_operand.hbm [shape: f32[8,1280], index: 1, kind: input, shape index: {}]   ;;  %s1066_s2 = inlined_call_operand.hbm [shape: f32[1280,128], index: 2, kind: input, shape index: {}]   ;;  %s1067_s3 = inlined_call_operand.hbm [shape: f32[8,128], index: 3, kind: output, shape index: {}]  }
   0x1   :  { %10 = vsyncpa [#allocation7], 0 }
   0x2   :  { %11 = vsyncpa [#allocation5], 0  ;;  %s993_s12 = smov [#allocation3]   ;;  %s994_s14 = smov [#allocation6]  }
   0x3   :  { %s20_s13 = sshll.u32 %s993_s12, 4  ;;  %s29_s15 = sshll.u32 %s994_s14, 4  ;;  %s21_s13 = int_to_ptr.vmem [resolvable:$true] %s20_s13  ;;  %s1018_s15 = int_to_ptr.vmem [resolvable:$true] %s29_s15 }
   0x4   :  { %s921_s18 = scalar_lea.hbm %s1065_s1, 1280 }
   0x5   :  { %p922_p0 = scmp.ne.s32.totalorder %s1065_s1, %s921_s18  ;;  %p925_p1 = scmp.lt.u32.totalorder %s921_s18, %s1065_s1 }
   0x7   :  { %p927_p2 = pnand %p925_p1, %p922_p0 }
   0x9   :  { %930 = shalt.err (!%p927_p2)
}
   0xa   :  { %s931_s23 = scalar_lea.vmem %s21_s13, 1280  ;;  %p936_p4 = scmp.lt.s32.totalorder %s21_s13, %s21_s13 }
   0xb   :  { %p932_p3 = scmp.ne.s32.totalorder %s21_s13, %s931_s23  ;;  %p937_p5 = scmp.lt.s32.totalorder %s931_s23, %s931_s23 }
   0xd   :  { %p938_p6 = por %p937_p5, %p936_p4 }
   0xf   :  { %p939_p7 = pnand %p938_p6, %p932_p3 }
  0x11   :  { %942 = shalt.err (!%p939_p7)
}
  0x12   :  { %23 = dma.hbm_to_vmem [thread:$0]  %s1065_s1, 1280, %s21_s13, [#allocation4]  }
  0x13   :  { %s943_s28 = scalar_lea.hbm %s1066_s2, 20480 }
  0x14   :  { %p944_p8 = scmp.ne.s32.totalorder %s1066_s2, %s943_s28  ;;  %p947_p9 = scmp.lt.u32.totalorder %s943_s28, %s1066_s2 }
  0x16   :  { %p949_p10 = pnand %p947_p9, %p944_p8 }
  0x18   :  { %952 = shalt.err (!%p949_p10)
}
  0x19   :  { %s953_s6 = scalar_lea.vmem %s1018_s15, 20480  ;;  %p958_p12 = scmp.lt.s32.totalorder %s1018_s15, %s1018_s15 }
  0x1a   :  { %p954_p11 = scmp.ne.s32.totalorder %s1018_s15, %s953_s6  ;;  %p959_p13 = scmp.lt.s32.totalorder %s953_s6, %s953_s6 }
  0x1c   :  { %p960_p0 = por %p959_p13, %p958_p12 }
  0x1e   :  { %p961_p1 = pnand %p960_p0, %p954_p11 }
  0x20   :  { %964 = shalt.err (!%p961_p1)
}
  0x21   :  { %s995_s1 = smov 128   ;;  %s996_s7 = smov 8  }
  0x22   :  { %35 = dma.hbm_to_vmem [thread:$0]  %s1066_s2, 20480, %s1018_s15, [#allocation7], %s995_s1, %s995_s1, %s996_s7  }
  0x23   :  { %987 = dma.done.wait [#allocation4], 1280  }
  0x24   :  { %988 = vsyncadd [#allocation4], 4294966016 }
  0x25   :  { %989 = dma.done.wait [#allocation7], 20480  }
  0x26   :  { %990 = vsyncadd [#allocation7], 4294946816  ;;  %v68_v0 = vld [vmem:[#allocation6 + $0x80] sm:$0xff]  ;;  %v69_v1 = vld [vmem:[#allocation6 + $0x88] sm:$0xff]  ;;  %s997_s11 = smov [#allocation8]  }
  0x27   :  { %v52_v2 = vld [vmem:[#allocation6] sm:$0xff]  ;;  %v756_v3 = vpack.c.bf16 %v69_v1, %v68_v0  ;;  %v53_v4 = vld [vmem:[#allocation6 + $0x8] sm:$0xff]  ;;  %v70_v11 = vld [vmem:[#allocation6 + $0x90] sm:$0xff]  ;;  %s571_s12 = sshll.u32 %s997_s11, 4  ;;  %s572_s12 = int_to_ptr.vmem [resolvable:$true] %s571_s12 }
  0x28   :  { %v100_v5 = vld [vmem:[#allocation6 + $0x180] sm:$0xff]  ;;  %v101_v6 = vld [vmem:[#allocation6 + $0x188] sm:$0xff]  ;;  %v758_v7 = vpack.c.bf16 %v53_v4, %v52_v2  ;;  %v71_v13 = vld [vmem:[#allocation6 + $0x98] sm:$0xff]  ;;  %p970_p3 = scmp.lt.s32.totalorder %s572_s12, %s572_s12 }
  0x29   :  { %v788_v8 = vpack.c.bf16 %v101_v6, %v100_v5  ;;  %v84_v9 = vld [vmem:[#allocation6 + $0x100] sm:$0xff]  ;;  %v85_v10 = vld [vmem:[#allocation6 + $0x108] sm:$0xff]  ;;  %757 = vmatprep.subr.bf16.mxu0 %v756_v3  ;;  %v54_v14 = vld [vmem:[#allocation6 + $0x10] sm:$0xff]  ;;  %v760_v16 = vpack.c.bf16 %v71_v13, %v70_v11 }
  0x2a   :  { %v790_v12 = vpack.c.bf16 %v85_v10, %v84_v9  ;;  %v55_v15 = vld [vmem:[#allocation6 + $0x18] sm:$0xff]  ;;  %759 = vmatpush3.bf16.msra.mxu0 %v758_v7  ;;  %v102_v18 = vld [vmem:[#allocation6 + $0x190] sm:$0xff]  ;;  %v72_v23 = vld [vmem:[#allocation6 + $0xa0] sm:$0xff] }
  0x2b   :  { %789 = vmatprep.subr.bf16.mxu1 %v788_v8  ;;  %v762_v17 = vpack.c.bf16 %v55_v15, %v54_v14  ;;  %v103_v19 = vld [vmem:[#allocation6 + $0x198] sm:$0xff]  ;;  %v86_v20 = vld [vmem:[#allocation6 + $0x110] sm:$0xff]  ;;  %v73_v24 = vld [vmem:[#allocation6 + $0xa8] sm:$0xff]  ;;  %761 = vmatprep.subr.bf16.mxu0 %v760_v16 }
  0x2c   :  { %791 = vmatpush3.bf16.msra.mxu1 %v790_v12  ;;  %v792_v21 = vpack.c.bf16 %v103_v19, %v102_v18  ;;  %v87_v22 = vld [vmem:[#allocation6 + $0x118] sm:$0xff]  ;;  %v764_v26 = vpack.c.bf16 %v73_v24, %v72_v23  ;;  %v56_v27 = vld [vmem:[#allocation6 + $0x20] sm:$0xff]  ;;  %v57_v28 = vld [vmem:[#allocation6 + $0x28] sm:$0xff] }
  0x2d   :  { %v794_v25 = vpack.c.bf16 %v87_v22, %v86_v20  ;;  %v104_v29 = vld [vmem:[#allocation6 + $0x1a0] sm:$0xff]  ;;  %v105_v30 = vld [vmem:[#allocation6 + $0x1a8] sm:$0xff]  ;;  %v766_v33 = vpack.c.bf16 %v57_v28, %v56_v27  ;;  %v74_v35 = vld [vmem:[#allocation6 + $0xb0] sm:$0xff] }
  0x2e   :  { %793 = vmatprep.subr.bf16.mxu1 %v792_v21  ;;  %v88_v31 = vld [vmem:[#allocation6 + $0x120] sm:$0xff]  ;;  %v89_v32 = vld [vmem:[#allocation6 + $0x128] sm:$0xff]  ;;  %763 = vmatpush3.bf16.msra.mxu0 %v762_v17  ;;  %v796_v34 = vpack.c.bf16 %v105_v30, %v104_v29  ;;  %v75_v36 = vld [vmem:[#allocation6 + $0xb8] sm:$0xff] }
  0x2f   :  { %v58_v37 = vld [vmem:[#allocation6 + $0x30] sm:$0xff]  ;;  %765 = vmatprep.subr.bf16.mxu0 %v764_v26  ;;  %v798_v38 = vpack.c.bf16 %v89_v32, %v88_v31  ;;  %v768_v39 = vpack.c.bf16 %v75_v36, %v74_v35  ;;  %v59_v40 = vld [vmem:[#allocation6 + $0x38] sm:$0xff]  ;;  %v76_v46 = vld [vmem:[#allocation6 + $0xc0] sm:$0xff] }
  0x30   :  { %795 = vmatpush3.bf16.msra.mxu1 %v794_v25  ;;  %v106_v41 = vld [vmem:[#allocation6 + $0x1b0] sm:$0xff]  ;;  %v107_v42 = vld [vmem:[#allocation6 + $0x1b8] sm:$0xff]  ;;  %v77_v47 = vld [vmem:[#allocation6 + $0xc8] sm:$0xff]  ;;  %v770_v48 = vpack.c.bf16 %v59_v40, %v58_v37 }
  0x31   :  { %797 = vmatprep.subr.bf16.mxu1 %v796_v34  ;;  %v800_v43 = vpack.c.bf16 %v107_v42, %v106_v41  ;;  %v90_v44 = vld [vmem:[#allocation6 + $0x130] sm:$0xff]  ;;  %v91_v45 = vld [vmem:[#allocation6 + $0x138] sm:$0xff]  ;;  %v108_v49 = vld [vmem:[#allocation6 + $0x1c0] sm:$0xff]  ;;  %v772_v52 = vpack.c.bf16 %v77_v47, %v76_v46 }
  0x32   :  { %767 = vmatpush3.bf16.msra.mxu0 %v766_v33  ;;  %v109_v50 = vld [vmem:[#allocation6 + $0x1c8] sm:$0xff]  ;;  %v802_v51 = vpack.c.bf16 %v91_v45, %v90_v44  ;;  %v60_v53 = vld [vmem:[#allocation6 + $0x40] sm:$0xff]  ;;  %v78_v58 = vld [vmem:[#allocation6 + $0xd0] sm:$0xff] }
  0x33   :  { %769 = vmatprep.subr.bf16.mxu0 %v768_v39  ;;  %v61_v54 = vld [vmem:[#allocation6 + $0x48] sm:$0xff]  ;;  %v92_v55 = vld [vmem:[#allocation6 + $0x140] sm:$0xff]  ;;  %v804_v56 = vpack.c.bf16 %v109_v50, %v108_v49  ;;  %v79_v59 = vld [vmem:[#allocation6 + $0xd8] sm:$0xff] }
  0x34   :  { %799 = vmatpush3.bf16.msra.mxu1 %v798_v38  ;;  %v93_v57 = vld [vmem:[#allocation6 + $0x148] sm:$0xff]  ;;  %v110_v60 = vld [vmem:[#allocation6 + $0x1d0] sm:$0xff]  ;;  %v111_v61 = vld [vmem:[#allocation6 + $0x1d8] sm:$0xff]  ;;  %v774_v62 = vpack.c.bf16 %v61_v54, %v60_v53  ;;  %v776_v0 = vpack.c.bf16 %v79_v59, %v78_v58 }
  0x35   :  { %801 = vmatprep.subr.bf16.mxu1 %v800_v43  ;;  %v806_v63 = vpack.c.bf16 %v93_v57, %v92_v55  ;;  %v62_v1 = vld [vmem:[#allocation6 + $0x50] sm:$0xff]  ;;  %v63_v2 = vld [vmem:[#allocation6 + $0x58] sm:$0xff]  ;;  %v808_v4 = vpack.c.bf16 %v111_v61, %v110_v60  ;;  %v80_v6 = vld [vmem:[#allocation6 + $0xe0] sm:$0xff] }
  0x36   :  { %771 = vmatpush3.bf16.msra.mxu0 %v770_v48  ;;  %v94_v3 = vld [vmem:[#allocation6 + $0x150] sm:$0xff]  ;;  %v95_v5 = vld [vmem:[#allocation6 + $0x158] sm:$0xff]  ;;  %v81_v7 = vld [vmem:[#allocation6 + $0xe8] sm:$0xff]  ;;  %v778_v10 = vpack.c.bf16 %v63_v2, %v62_v1 }
  0x37   :  { %773 = vmatprep.subr.bf16.mxu0 %v772_v52  ;;  %v112_v8 = vld [vmem:[#allocation6 + $0x1e0] sm:$0xff]  ;;  %v113_v9 = vld [vmem:[#allocation6 + $0x1e8] sm:$0xff]  ;;  %v43_v12 = vld [vmem:[#allocation3 + $0x8] sm:$0xff]  ;;  %v810_v13 = vpack.c.bf16 %v95_v5, %v94_v3  ;;  %v780_v14 = vpack.c.bf16 %v81_v7, %v80_v6 }
  0x38   :  { %803 = vmatpush3.bf16.msra.mxu1 %v802_v51  ;;  %v64_v11 = vld [vmem:[#allocation6 + $0x60] sm:$0xff]  ;;  %v65_v15 = vld [vmem:[#allocation6 + $0x68] sm:$0xff]  ;;  %v812_v18 = vpack.c.bf16 %v113_v9, %v112_v8  ;;  %v82_v19 = vld [vmem:[#allocation6 + $0xf0] sm:$0xff]  ;;  %278 = vmatprep.mubr.f32.mxu0 %v43_v12 }
  0x39   :  { %805 = vmatprep.subr.bf16.mxu1 %v804_v56  ;;  %v96_v16 = vld [vmem:[#allocation6 + $0x160] sm:$0xff]  ;;  %v97_v17 = vld [vmem:[#allocation6 + $0x168] sm:$0xff]  ;;  %v83_v20 = vld [vmem:[#allocation6 + $0xf8] sm:$0xff]  ;;  %v782_v24 = vpack.c.bf16 %v65_v15, %v64_v11 }
  0x3a   :  { %775 = vmatpush3.bf16.msra.mxu0 %v774_v62  ;;  %v45_v21 = vld [vmem:[#allocation3 + $0x18] sm:$0xff]  ;;  %v114_v22 = vld [vmem:[#allocation6 + $0x1f0] sm:$0xff]  ;;  %v115_v23 = vld [vmem:[#allocation6 + $0x1f8] sm:$0xff]  ;;  %v814_v25 = vpack.c.bf16 %v97_v17, %v96_v16  ;;  %v784_v26 = vpack.c.bf16 %v83_v20, %v82_v19 }
  0x3b   :  { %777 = vmatprep.subr.bf16.mxu0 %v776_v0  ;;  %348 = vmatprep.mubr.f32.mxu1 %v45_v21  ;;  %v66_v27 = vld [vmem:[#allocation6 + $0x70] sm:$0xff]  ;;  %v67_v28 = vld [vmem:[#allocation6 + $0x78] sm:$0xff]  ;;  %v816_v30 = vpack.c.bf16 %v115_v23, %v114_v22  ;;  %v132_v32 = vld [vmem:[#allocation6 + $0x280] sm:$0xff] }
  0x3c   :  { %807 = vmatpush3.bf16.msra.mxu1 %v806_v63  ;;  %v98_v29 = vld [vmem:[#allocation6 + $0x170] sm:$0xff]  ;;  %v99_v31 = vld [vmem:[#allocation6 + $0x178] sm:$0xff]  ;;  %v133_v33 = vld [vmem:[#allocation6 + $0x288] sm:$0xff]  ;;  %v786_v36 = vpack.c.bf16 %v67_v28, %v66_v27 }
  0x3d   :  { %809 = vmatprep.subr.bf16.mxu1 %v808_v4  ;;  %v164_v34 = vld [vmem:[#allocation6 + $0x380] sm:$0xff]  ;;  %v165_v35 = vld [vmem:[#allocation6 + $0x388] sm:$0xff]  ;;  %v818_v37 = vpack.c.bf16 %v99_v31, %v98_v29  ;;  %v820_v38 = vpack.c.bf16 %v133_v33, %v132_v32  ;;  %v134_v44 = vld [vmem:[#allocation6 + $0x290] sm:$0xff] }
  0x3e   :  { %779 = vmatpush3.bf16.msra.mxu0 %v778_v10  ;;  %v116_v39 = vld [vmem:[#allocation6 + $0x200] sm:$0xff]  ;;  %v117_v40 = vld [vmem:[#allocation6 + $0x208] sm:$0xff]  ;;  %v852_v42 = vpack.c.bf16 %v165_v35, %v164_v34  ;;  %v135_v45 = vld [vmem:[#allocation6 + $0x298] sm:$0xff] }
  0x3f   :  { %781 = vmatprep.subr.bf16.mxu0 %v780_v14  ;;  %v148_v41 = vld [vmem:[#allocation6 + $0x300] sm:$0xff]  ;;  %v149_v43 = vld [vmem:[#allocation6 + $0x308] sm:$0xff]  ;;  %v166_v46 = vld [vmem:[#allocation6 + $0x390] sm:$0xff]  ;;  %v822_v49 = vpack.c.bf16 %v117_v40, %v116_v39  ;;  %v824_v52 = vpack.c.bf16 %v135_v45, %v134_v44 }
  0x40   :  { %811 = vmatpush3.bf16.msra.mxu1 %v810_v13  ;;  %v167_v47 = vld [vmem:[#allocation6 + $0x398] sm:$0xff]  ;;  %v42_v48 = vld [vmem:[#allocation3] sm:$0xff]  ;;  %v44_v50 = vld [vmem:[#allocation3 + $0x10] sm:$0xff]  ;;  %v854_v51 = vpack.c.bf16 %v149_v43, %v148_v41 }
  0x41   :  { %813 = vmatprep.subr.bf16.mxu1 %v812_v18  ;;  %v118_v53 = vld [vmem:[#allocation6 + $0x210] sm:$0xff]  ;;  %v119_v54 = vld [vmem:[#allocation6 + $0x218] sm:$0xff]  ;;  %v856_v56 = vpack.c.bf16 %v167_v47, %v166_v46  ;;  %v136_v58 = vld [vmem:[#allocation6 + $0x2a0] sm:$0xff] }
  0x42   :  { %783 = vmatpush3.bf16.msra.mxu0 %v782_v24  ;;  %v150_v55 = vld [vmem:[#allocation6 + $0x310] sm:$0xff]  ;;  %v151_v57 = vld [vmem:[#allocation6 + $0x318] sm:$0xff]  ;;  %v137_v59 = vld [vmem:[#allocation6 + $0x2a8] sm:$0xff]  ;;  %v826_v62 = vpack.c.bf16 %v119_v54, %v118_v53 }
  0x43   :  { %785 = vmatprep.subr.bf16.mxu0 %v784_v26  ;;  %v168_v60 = vld [vmem:[#allocation6 + $0x3a0] sm:$0xff]  ;;  %v169_v61 = vld [vmem:[#allocation6 + $0x3a8] sm:$0xff]  ;;  %v858_v63 = vpack.c.bf16 %v151_v57, %v150_v55  ;;  %v828_v0 = vpack.c.bf16 %v137_v59, %v136_v58  ;;  %v138_v6 = vld [vmem:[#allocation6 + $0x2b0] sm:$0xff] }
  0x44   :  { %815 = vmatpush3.bf16.msra.mxu1 %v814_v25  ;;  %v120_v1 = vld [vmem:[#allocation6 + $0x220] sm:$0xff]  ;;  %v121_v2 = vld [vmem:[#allocation6 + $0x228] sm:$0xff]  ;;  %v860_v4 = vpack.c.bf16 %v169_v61, %v168_v60  ;;  %v139_v7 = vld [vmem:[#allocation6 + $0x2b8] sm:$0xff] }
  0x45   :  { %817 = vmatprep.subr.bf16.mxu1 %v816_v30  ;;  %v152_v3 = vld [vmem:[#allocation6 + $0x320] sm:$0xff]  ;;  %v153_v5 = vld [vmem:[#allocation6 + $0x328] sm:$0xff]  ;;  %v170_v8 = vld [vmem:[#allocation6 + $0x3b0] sm:$0xff]  ;;  %v830_v10 = vpack.c.bf16 %v121_v2, %v120_v1  ;;  %v832_v12 = vpack.c.bf16 %v139_v7, %v138_v6 }
  0x46   :  { %787 = vmatpush3.bf16.msra.mxu0 %v786_v36  ;;  %v171_v9 = vld [vmem:[#allocation6 + $0x3b8] sm:$0xff]  ;;  %v862_v11 = vpack.c.bf16 %v153_v5, %v152_v3  ;;  %v122_v13 = vld [vmem:[#allocation6 + $0x230] sm:$0xff]  ;;  %v140_v18 = vld [vmem:[#allocation6 + $0x2c0] sm:$0xff] }
  0x47   :  { %821 = vmatprep.subr.bf16.mxu0 %v820_v38  ;;  %v123_v14 = vld [vmem:[#allocation6 + $0x238] sm:$0xff]  ;;  %v154_v15 = vld [vmem:[#allocation6 + $0x330] sm:$0xff]  ;;  %v864_v16 = vpack.c.bf16 %v171_v9, %v170_v8  ;;  %v141_v19 = vld [vmem:[#allocation6 + $0x2c8] sm:$0xff] }
  0x48   :  { %819 = vmatpush3.bf16.msra.mxu1 %v818_v37  ;;  %v155_v17 = vld [vmem:[#allocation6 + $0x338] sm:$0xff]  ;;  %v172_v20 = vld [vmem:[#allocation6 + $0x3c0] sm:$0xff]  ;;  %v173_v21 = vld [vmem:[#allocation6 + $0x3c8] sm:$0xff]  ;;  %v834_v23 = vpack.c.bf16 %v123_v14, %v122_v13  ;;  %v836_v26 = vpack.c.bf16 %v141_v19, %v140_v18 }
  0x49   :  { %853 = vmatprep.subr.bf16.mxu1 %v852_v42  ;;  %279 = vmatmul.mubr.f32.vlgmr.msra.gmra.mrb[0].mxu0 %v42_v48  ;;  %v47_v22 = vld [vmem:[#allocation3 + $0x28] sm:$0xff]  ;;  %v124_v24 = vld [vmem:[#allocation6 + $0x240] sm:$0xff]  ;;  %v866_v25 = vpack.c.bf16 %v155_v17, %v154_v15  ;;  %v125_v27 = vld [vmem:[#allocation6 + $0x248] sm:$0xff]  ;;  %v868_v30 = vpack.c.bf16 %v173_v21, %v172_v20 }
  0x4a   :  { %823 = vmatpush3.bf16.msra.mxu0 %v822_v49  ;;  %418 = vmatprep.mubr.f32.mxu0 %v47_v22  ;;  %v156_v28 = vld [vmem:[#allocation6 + $0x340] sm:$0xff]  ;;  %v49_v29 = vld [vmem:[#allocation3 + $0x38] sm:$0xff]  ;;  %v142_v32 = vld [vmem:[#allocation6 + $0x2d0] sm:$0xff]  ;;  %v838_v36 = vpack.c.bf16 %v125_v27, %v124_v24 }
  0x4b   :  { %349 = vmatmul.mubr.f32.vlgmr.msra.gmra.mrb[0].mxu1 %v44_v50  ;;  %825 = vmatprep.subr.bf16.mxu0 %v824_v52  ;;  %v157_v31 = vld [vmem:[#allocation6 + $0x348] sm:$0xff]  ;;  %v143_v33 = vld [vmem:[#allocation6 + $0x2d8] sm:$0xff]  ;;  %v174_v34 = vld [vmem:[#allocation6 + $0x3d0] sm:$0xff] }
  0x4c   :  { %855 = vmatpush3.bf16.msra.mxu1 %v854_v51  ;;  %488 = vmatprep.mubr.f32.mxu1 %v49_v29  ;;  %v175_v35 = vld [vmem:[#allocation6 + $0x3d8] sm:$0xff]  ;;  %v870_v37 = vpack.c.bf16 %v157_v31, %v156_v28  ;;  %v840_v38 = vpack.c.bf16 %v143_v33, %v142_v32  ;;  %v126_v39 = vld [vmem:[#allocation6 + $0x250] sm:$0xff]  ;;  %v144_v44 = vld [vmem:[#allocation6 + $0x2e0] sm:$0xff] }
  0x4d   :  { %857 = vmatprep.subr.bf16.mxu1 %v856_v56  ;;  %v127_v40 = vld [vmem:[#allocation6 + $0x258] sm:$0xff]  ;;  %v158_v41 = vld [vmem:[#allocation6 + $0x350] sm:$0xff]  ;;  %v872_v42 = vpack.c.bf16 %v175_v35, %v174_v34  ;;  %v145_v45 = vld [vmem:[#allocation6 + $0x2e8] sm:$0xff] }
  0x4e   :  { %827 = vmatpush3.bf16.msra.mxu0 %v826_v62  ;;  %v159_v43 = vld [vmem:[#allocation6 + $0x358] sm:$0xff]  ;;  %v176_v46 = vld [vmem:[#allocation6 + $0x3e0] sm:$0xff]  ;;  %v177_v47 = vld [vmem:[#allocation6 + $0x3e8] sm:$0xff]  ;;  %v842_v48 = vpack.c.bf16 %v127_v40, %v126_v39  ;;  %v844_v50 = vpack.c.bf16 %v145_v45, %v144_v44 }
  0x4f   :  { %829 = vmatprep.subr.bf16.mxu0 %v828_v0  ;;  %v874_v49 = vpack.c.bf16 %v159_v43, %v158_v41  ;;  %v128_v51 = vld [vmem:[#allocation6 + $0x260] sm:$0xff]  ;;  %v129_v52 = vld [vmem:[#allocation6 + $0x268] sm:$0xff]  ;;  %v876_v54 = vpack.c.bf16 %v177_v47, %v176_v46  ;;  %v146_v56 = vld [vmem:[#allocation6 + $0x2f0] sm:$0xff] }
  0x50   :  { %859 = vmatpush3.bf16.msra.mxu1 %v858_v63  ;;  %v160_v53 = vld [vmem:[#allocation6 + $0x360] sm:$0xff]  ;;  %v161_v55 = vld [vmem:[#allocation6 + $0x368] sm:$0xff]  ;;  %v147_v57 = vld [vmem:[#allocation6 + $0x2f8] sm:$0xff]  ;;  %v846_v60 = vpack.c.bf16 %v129_v52, %v128_v51 }
  0x51   :  { %861 = vmatprep.subr.bf16.mxu1 %v860_v4  ;;  %v178_v58 = vld [vmem:[#allocation6 + $0x3f0] sm:$0xff]  ;;  %v179_v59 = vld [vmem:[#allocation6 + $0x3f8] sm:$0xff]  ;;  %v878_v61 = vpack.c.bf16 %v161_v55, %v160_v53  ;;  %v848_v62 = vpack.c.bf16 %v147_v57, %v146_v56  ;;  %v196_v4 = vld [vmem:[#allocation6 + $0x480] sm:$0xff] }
  0x52   :  { %831 = vmatpush3.bf16.msra.mxu0 %v830_v10  ;;  %v130_v63 = vld [vmem:[#allocation6 + $0x270] sm:$0xff]  ;;  %v131_v0 = vld [vmem:[#allocation6 + $0x278] sm:$0xff]  ;;  %v880_v2 = vpack.c.bf16 %v179_v59, %v178_v58  ;;  %v197_v5 = vld [vmem:[#allocation6 + $0x488] sm:$0xff]  ;;  %v213_v59 = vstv %s1064_s0  ;;  %s965_s0 = scalar_lea.vmem %s572_s12, 128 }
  0x53   :  { %833 = vmatprep.subr.bf16.mxu0 %v832_v12  ;;  %v162_v1 = vld [vmem:[#allocation6 + $0x370] sm:$0xff]  ;;  %v163_v3 = vld [vmem:[#allocation6 + $0x378] sm:$0xff]  ;;  %v850_v6 = vpack.c.bf16 %v131_v0, %v130_v63  ;;  %v884_v8 = vpack.c.bf16 %v197_v5, %v196_v4  ;;  %v180_v9 = vld [vmem:[#allocation6 + $0x400] sm:$0xff]  ;;  %p966_p2 = scmp.ne.s32.totalorder %s572_s12, %s965_s0  ;;  %p971_p4 = scmp.lt.s32.totalorder %s965_s0, %s965_s0 }
  0x54   :  { %863 = vmatpush3.bf16.msra.mxu1 %v862_v11  ;;  %v882_v7 = vpack.c.bf16 %v163_v3, %v162_v1  ;;  %v181_v10 = vld [vmem:[#allocation6 + $0x408] sm:$0xff]  ;;  %v198_v11 = vld [vmem:[#allocation6 + $0x490] sm:$0xff]  ;;  %v199_v12 = vld [vmem:[#allocation6 + $0x498] sm:$0xff] }
  0x55   :  { %865 = vmatprep.subr.bf16.mxu1 %v864_v16  ;;  %v46_v13 = vld [vmem:[#allocation3 + $0x20] sm:$0xff]  ;;  %v886_v14 = vpack.c.bf16 %v181_v10, %v180_v9  ;;  %v48_v15 = vld [vmem:[#allocation3 + $0x30] sm:$0xff]  ;;  %v888_v16 = vpack.c.bf16 %v199_v12, %v198_v11  ;;  %v183_v18 = vld [vmem:[#allocation6 + $0x418] sm:$0xff]  ;;  %p972_p5 = por %p971_p4, %p970_p3 }
  0x56   :  { %835 = vmatpush3.bf16.msra.mxu0 %v834_v23  ;;  %v182_v17 = vld [vmem:[#allocation6 + $0x410] sm:$0xff]  ;;  %v200_v19 = vld [vmem:[#allocation6 + $0x4a0] sm:$0xff]  ;;  %v201_v20 = vld [vmem:[#allocation6 + $0x4a8] sm:$0xff] }
  0x57   :  { %837 = vmatprep.subr.bf16.mxu0 %v836_v26  ;;  %v51_v21 = vld [vmem:[#allocation3 + $0x48] sm:$0xff]  ;;  %v890_v22 = vpack.c.bf16 %v183_v18, %v182_v17  ;;  %v892_v23 = vpack.c.bf16 %v201_v20, %v200_v19  ;;  %v184_v24 = vld [vmem:[#allocation6 + $0x420] sm:$0xff]  ;;  %v202_v26 = vld [vmem:[#allocation6 + $0x4b0] sm:$0xff]  ;;  %p973_p6 = pnand %p972_p5, %p966_p2 }
  0x58   :  { %867 = vmatpush3.bf16.msra.mxu1 %v866_v25  ;;  %v185_v25 = vld [vmem:[#allocation6 + $0x428] sm:$0xff]  ;;  %v203_v27 = vld [vmem:[#allocation6 + $0x4b8] sm:$0xff]  ;;  %v204_v32 = vld [vmem:[#allocation6 + $0x4c0] sm:$0xff] }
  0x59   :  { %869 = vmatprep.subr.bf16.mxu1 %v868_v30  ;;  %v894_v28 = vpack.c.bf16 %v185_v25, %v184_v24  ;;  %v896_v29 = vpack.c.bf16 %v203_v27, %v202_v26  ;;  %v186_v30 = vld [vmem:[#allocation6 + $0x430] sm:$0xff]  ;;  %v187_v31 = vld [vmem:[#allocation6 + $0x438] sm:$0xff]  ;;  %v205_v33 = vld [vmem:[#allocation6 + $0x4c8] sm:$0xff] }
  0x5a   :  { %839 = vmatpush3.bf16.msra.mxu0 %v838_v36  ;;  %v898_v34 = vpack.c.bf16 %v187_v31, %v186_v30  ;;  %v900_v35 = vpack.c.bf16 %v205_v33, %v204_v32  ;;  %v188_v36 = vld [vmem:[#allocation6 + $0x440] sm:$0xff]  ;;  %v207_v39 = vld [vmem:[#allocation6 + $0x4d8] sm:$0xff]  ;;  %v209_v45 = vld [vmem:[#allocation6 + $0x4e8] sm:$0xff] }
  0x5b   :  { %841 = vmatprep.subr.bf16.mxu0 %v840_v38  ;;  %v206_v38 = vld [vmem:[#allocation6 + $0x4d0] sm:$0xff]  ;;  %v191_v43 = vld [vmem:[#allocation6 + $0x458] sm:$0xff]  ;;  %v208_v44 = vld [vmem:[#allocation6 + $0x4e0] sm:$0xff] }
  0x5c   :  { %871 = vmatpush3.bf16.msra.mxu1 %v870_v37  ;;  %v189_v37 = vld [vmem:[#allocation6 + $0x448] sm:$0xff]  ;;  %v904_v41 = vpack.c.bf16 %v207_v39, %v206_v38  ;;  %v908_v47 = vpack.c.bf16 %v209_v45, %v208_v44  ;;  %v211_v51 = vld [vmem:[#allocation6 + $0x4f8] sm:$0xff]  ;;  %v50_v57 = vld [vmem:[#allocation3 + $0x40] sm:$0xff] }
  0x5d   :  { %873 = vmatprep.subr.bf16.mxu1 %v872_v42  ;;  %v902_v40 = vpack.c.bf16 %v189_v37, %v188_v36  ;;  %v190_v42 = vld [vmem:[#allocation6 + $0x450] sm:$0xff]  ;;  %v195_v55 = vld [vmem:[#allocation6 + $0x478] sm:$0xff] }
  0x5e   :  { %843 = vmatpush3.bf16.msra.mxu0 %v842_v48  ;;  %v906_v46 = vpack.c.bf16 %v191_v43, %v190_v42  ;;  %v192_v48 = vld [vmem:[#allocation6 + $0x460] sm:$0xff] }
  0x5f   :  { %845 = vmatprep.subr.bf16.mxu0 %v844_v50  ;;  %v210_v50 = vld [vmem:[#allocation6 + $0x4f0] sm:$0xff] }
  0x60   :  { %875 = vmatpush3.bf16.msra.mxu1 %v874_v49  ;;  %v193_v49 = vld [vmem:[#allocation6 + $0x468] sm:$0xff]  ;;  %v912_v53 = vpack.c.bf16 %v211_v51, %v210_v50 }
  0x61   :  { %877 = vmatprep.subr.bf16.mxu1 %v876_v54  ;;  %v910_v52 = vpack.c.bf16 %v193_v49, %v192_v48  ;;  %v194_v54 = vld [vmem:[#allocation6 + $0x470] sm:$0xff] }
  0x62   :  { %847 = vmatpush3.bf16.msra.mxu0 %v846_v60  ;;  %v914_v56 = vpack.c.bf16 %v195_v55, %v194_v54 }
  0x63   :  { %849 = vmatprep.subr.bf16.mxu0 %v848_v62 }
  0x64   :  { %879 = vmatpush3.bf16.msra.mxu1 %v878_v61 }
  0x65   :  { %881 = vmatprep.subr.bf16.mxu1 %v880_v2 }
  0x66   :  { %851 = vmatpush3.bf16.msra.mxu0 %v850_v6 }
  0x67   :  { %885 = vmatprep.subr.bf16.mxu0 %v884_v8 }
  0x68   :  { %883 = vmatpush3.bf16.msra.mxu1 %v882_v7 }
  0x69   :  { %419 = vmatmul.mubr.f32.vlgmr.msra.gmra.mrb[2].mxu0 %v46_v13 }
  0x6a   :  { %887 = vmatpush3.bf16.msra.mxu0 %v886_v14  ;;  %558 = vmatprep.mubr.f32.mxu0 %v51_v21 }
  0x6b   :  { %489 = vmatmul.mubr.f32.vlgmr.msra.gmra.mrb[2].mxu1 %v48_v15  ;;  %889 = vmatprep.subr.bf16.mxu0 %v888_v16 }
  0x6e   :  { %891 = vmatpush3.bf16.msra.mxu0 %v890_v22 }
  0x6f   :  { %893 = vmatprep.subr.bf16.mxu0 %v892_v23 }
  0x72   :  { %895 = vmatpush3.bf16.msra.mxu0 %v894_v28 }
  0x73   :  { %897 = vmatprep.subr.bf16.mxu0 %v896_v29 }
  0x76   :  { %899 = vmatpush3.bf16.msra.mxu0 %v898_v34 }
  0x77   :  { %901 = vmatprep.subr.bf16.mxu0 %v900_v35 }
  0x7a   :  { %903 = vmatpush3.bf16.msra.mxu0 %v902_v40 }
  0x7b   :  { %905 = vmatprep.subr.bf16.mxu0 %v904_v41 }
  0x7e   :  { %907 = vmatpush3.bf16.msra.mxu0 %v906_v46 }
  0x7f   :  { %909 = vmatprep.subr.bf16.mxu0 %v908_v47 }
  0x82   :  { %911 = vmatpush3.bf16.msra.mxu0 %v910_v52 }
  0x83   :  { %913 = vmatprep.subr.bf16.mxu0 %v912_v53 }
  0x86   :  { %915 = vmatpush3.bf16.msra.mxu0 %v914_v56 }
  0x89   :  { %559 = vmatmul.mubr.f32.vlgmr.msra.gmra.mrb[4].mxu0 %v50_v57 }
 0x11c   :  { %v613_v58 = vpop.f32.mrb[0].mxu0 }
 0x11d   :  { %v614_v60 = vpop.f32.mrb[1].mxu0 }
 0x11e   :  { %v648_v61 = vpop.f32.mrb[0].mxu1  ;;  %v615_v62 = vadd.f32 %v614_v60, %v613_v58 }
 0x11f   :  { %v649_v63 = vpop.f32.mrb[1].mxu1 }
 0x120   :  { %v650_v0 = vadd.f32 %v649_v63, %v648_v61  ;;  %v281_v1 = vadd.f32 %v615_v62, %v213_v59 }
 0x122   :  { %v351_v2 = vadd.f32 %v650_v0, %v281_v1 }
 0x13c   :  { %v683_v3 = vpop.f32.mrb[2].mxu0 }
 0x13d   :  { %v684_v4 = vpop.f32.mrb[3].mxu0 }
 0x13e   :  { %v718_v5 = vpop.f32.mrb[2].mxu1  ;;  %v685_v6 = vadd.f32 %v684_v4, %v683_v3 }
 0x13f   :  { %v719_v7 = vpop.f32.mrb[3].mxu1 }
 0x140   :  { %v720_v8 = vadd.f32 %v719_v7, %v718_v5  ;;  %v421_v9 = vadd.f32 %v685_v6, %v351_v2 }
 0x142   :  { %v491_v10 = vadd.f32 %v720_v8, %v421_v9 }
 0x15c   :  { %v753_v11 = vpop.f32.mrb[4].mxu0 }
 0x15d   :  { %v754_v12 = vpop.f32.mrb[5].mxu0 }
 0x15e   :  { %v755_v13 = vadd.f32 %v754_v12, %v753_v11 }
 0x160   :  { %v561_v14 = vadd.f32 %v755_v13, %v491_v10 }
 0x162   :  { %564 = vst [vmem:[#allocation8] sm:$0xff] %v561_v14 }
 0x163   :  { %976 = shalt.err (!%p973_p6)
}
 0x164   :  { %s977_s15 = scalar_lea.hbm %s1067_s3, 128 }
 0x165   :  { %p978_p7 = scmp.ne.s32.totalorder %s1067_s3, %s977_s15  ;;  %p981_p8 = scmp.lt.u32.totalorder %s977_s15, %s1067_s3 }
 0x167   :  { %p983_p9 = pnand %p981_p8, %p978_p7 }
 0x169   :  { %986 = shalt.err (!%p983_p9)
}
 0x16a   :  { %574 = dma.vmem_to_hbm [thread:$0]  %s572_s12, 128, %s1067_s3, [#allocation5]  }
 0x16b   :  { %991 = dma.done.wait [#allocation5], 128  }
 0x16c   :  { %992 = vsyncadd [#allocation5], 4294967168 }
 0x16d   :  { %578 = vsyncpa [#allocation4], 1 }
 0x16e   :  { %579 = vsyncpa [#allocation7], 1 }
 0x16f   :  { %580 = vsyncpa [#allocation5], 1 }

</bundles_post_ra>
